<compile_context>
chip_gen: v6e
topology: v6e:2x2x1
jax: 0.10.0
libtpu: 0.0.40
codegen_flags: <defaults>
</compile_context>

<pallas_src>
import jax
import jax.numpy as jnp
from jax import lax
from jax.experimental import pallas as pl
from jax.experimental.pallas import tpu as pltpu


def _round_up(x, m):
    return ((x + m - 1) // m) * m


def _vmem_capacity_bytes():
    """Per-core VMEM capacity; conservative 64 MiB (v7x) fallback."""
    try:
        return int(pltpu.get_tpu_info().vmem_capacity_bytes)
    except Exception:
        return 64 * 1024 * 1024


def _pick_tn(cout_pad):
    """Column tile: lane-dense multiple of 128 that divides Cout_pad."""
    if cout_pad <= 512:
        return cout_pad
    for cand in (512, 384, 256, 128):
        if cout_pad % cand == 0:
            return cand
    return 128


def _pick_tm(rows, tk, tn, cbytes, obytes, budget_bytes, max_tm=1024):
    """Largest row tile (multiple of 8) whose footprint fits the VMEM budget.

    Footprint counts double-buffered LHS/RHS/bias/output blocks plus the
    f32 accumulator scratch (the previously un-budgeted intermediate).
    """
    fixed = 2 * tk * tn * cbytes + 2 * tn * 4            # weight + bias (x2 buf)
    per_row = 2 * tk * cbytes + 2 * tn * obytes + tn * 4  # lhs + out (x2) + acc
    avail = max(0, budget_bytes - fixed)
    tm = (avail // per_row) // 8 * 8
    tm = int(max(8, min(max_tm, tm)))
    tm = min(tm, _round_up(rows, 8))
    return max(8, tm)


def _make_gemm_kernel(relu, has_bias, n_k_tiles):
    """Tiled GEMM with f32 accumulator; bias + ReLU fused on the last K step."""

    def kernel(*refs):
        if has_bias:
            a_ref, w_ref, b_ref, o_ref, acc_ref = refs
        else:
            a_ref, w_ref, o_ref, acc_ref = refs
            b_ref = None
        k = pl.program_id(2)

        @pl.when(k == 0)
        def _():
            acc_ref[...] = jnp.zeros_like(acc_ref)

        acc_ref[...] += jnp.dot(a_ref[...], w_ref[...],
                                preferred_element_type=jnp.float32)

        @pl.when(k == n_k_tiles - 1)
        def _():
            acc = acc_ref[...]
            if has_bias:
                acc = acc + b_ref[...]            # (1, TN) broadcast
            if relu:
                acc = jnp.maximum(acc, 0.0)
            o_ref[...] = acc.astype(o_ref.dtype)

    return kernel


def basic_conv(x_nchw, weight_oihw, *, bias=None, stride=1, padding=0,
               dilation=1, groups=1, relu=True, compute_dtype=None):
    """Forward pass of BasicConv: Conv2d (+ optional bias) (+ optional ReLU).

    x_nchw:      (N, C_in, H, W)        -- PyTorch NCHW convention
    weight_oihw: (C_out, C_in, KH, KW)  -- PyTorch Conv2d weight convention
    bias:        optional (C_out,)
    compute_dtype: matmul input dtype (None -> same as input; pass
                   jnp.bfloat16 for the fast bf16-MXU path, f32 accumulation).
    returns:     (N, C_out, H_out, W_out)
    """
    if groups != 1:
        # TODO(synk): grouped convolution not implemented (module default groups=1).
        raise NotImplementedError("groups != 1 not supported")

    if isinstance(stride, int):
        stride = (stride, stride)
    if isinstance(padding, int):
        padding = (padding, padding)
    if isinstance(dilation, int):
        dilation = (dilation, dilation)

    N, Cin, H, W = x_nchw.shape
    Cout, Cin_w, KH, KW = weight_oihw.shape
    assert Cin == Cin_w

    sh, sw = stride
    ph, pw = padding
    dh, dw = dilation
    Ho = (H + 2 * ph - dh * (KH - 1) - 1) // sh + 1
    Wo = (W + 2 * pw - dw * (KW - 1) - 1) // sw + 1

    out_dtype = x_nchw.dtype
    if compute_dtype is None:
        compute_dtype = x_nchw.dtype
    compute_dtype = jnp.dtype(compute_dtype)
    cbytes = compute_dtype.itemsize
    obytes = jnp.dtype(out_dtype).itemsize

    # ---------------- wrapper glue: im2col packing (layout plumbing) --------
    # NCHW -> NHWC, spatial zero-pad, cast to the matmul dtype.
    x_nhwc = jnp.transpose(x_nchw, (0, 2, 3, 1)).astype(compute_dtype)
    x_pad = jnp.pad(x_nhwc, ((0, 0), (ph, ph), (pw, pw), (0, 0)))

    # Unit-stride-in-kernel equivalent: each (kh, kw) tap is sliced here in
    # XLA, concatenated on the channel axis in (kh, kw, cin) row-major order.
    taps = []
    for kh in range(KH):
        for kw in range(KW):
            taps.append(lax.slice(
                x_pad,
                (0, kh * dh, kw * dw, 0),
                (N, kh * dh + (Ho - 1) * sh + 1,
                 kw * dw + (Wo - 1) * sw + 1, Cin),
                (1, sh, sw, 1)))                       # (N, Ho, Wo, Cin)
    patches = taps[0] if len(taps) == 1 else jnp.concatenate(taps, axis=-1)

    R = N * Ho * Wo                                     # batch folded into rows
    Kd = KH * KW * Cin
    a_mat = patches.reshape(R, Kd)

    # Weight: OIHW -> (KH*KW*Cin, Cout), row order (kh, kw, cin) matches taps.
    w_mat = jnp.transpose(weight_oihw, (2, 3, 1, 0)).astype(compute_dtype)
    w_mat = w_mat.reshape(Kd, Cout)

    # ---------------- tile selection & padding ------------------------------
    Cout_pad = _round_up(Cout, 128)                     # lane-dense output / RHS
    TN = _pick_tn(Cout_pad)

    K_TILE_MAX = 2048
    if Kd <= K_TILE_MAX:
        TK, Kd_pad = Kd, Kd                             # full-K block (no K grid)
    else:
        TK = 1024
        Kd_pad = _round_up(Kd, TK)

    cap = _vmem_capacity_bytes()
    budget = min(int(0.6 * cap), cap - 8 * 1024 * 1024)  # headroom for compiler
    TM = _pick_tm(R, TK, TN, cbytes, obytes, budget)
    R_pad = _round_up(R, TM)

    a_mat = jnp.pad(a_mat, ((0, R_pad - R), (0, Kd_pad - Kd)))
    w_mat = jnp.pad(w_mat, ((0, Kd_pad - Kd), (0, Cout_pad - Cout)))

    has_bias = bias is not None
    inputs = [a_mat, w_mat]
    in_specs = [
        pl.BlockSpec((TM, TK), lambda m, n, k: (m, k)),
        pl.BlockSpec((TK, TN), lambda m, n, k: (k, n)),
    ]
    if has_bias:
        b_pad = jnp.pad(bias.astype(jnp.float32), (0, Cout_pad - Cout))
        inputs.append(b_pad.reshape(1, Cout_pad))
        in_specs.append(pl.BlockSpec((1, TN), lambda m, n, k: (0, n)))

    n_m = R_pad // TM
    n_n = Cout_pad // TN
    n_k = Kd_pad // TK

    kernel = _make_gemm_kernel(relu, has_bias, n_k)

    footprint = (2 * TM * TK * cbytes + 2 * TK * TN * cbytes
                 + 2 * TM * TN * obytes + 2 * TN * 4 + TM * TN * 4)
    vmem_limit = int(min(cap - 4 * 1024 * 1024,
                         max(budget, footprint + (4 << 20))))

    cost = pl.CostEstimate(
        flops=2 * R_pad * Kd_pad * Cout_pad,
        transcendentals=0,
        bytes_accessed=(R_pad * Kd_pad * cbytes + Kd_pad * Cout_pad * cbytes
                        + (Cout_pad * 4 if has_bias else 0)
                        + R_pad * Cout_pad * obytes))

    out_pad = pl.pallas_call(
        kernel,
        out_shape=jax.ShapeDtypeStruct((R_pad, Cout_pad), out_dtype),
        grid_spec=pltpu.PrefetchScalarGridSpec(
            num_scalar_prefetch=0,
            grid=(n_m, n_n, n_k),
            in_specs=in_specs,
            out_specs=pl.BlockSpec((TM, TN), lambda m, n, k: (m, n)),
            scratch_shapes=[pltpu.VMEM((TM, TN), jnp.float32)],
        ),
        compiler_params=pltpu.CompilerParams(
            dimension_semantics=("parallel", "parallel", "arbitrary"),
            vmem_limit_bytes=vmem_limit),
        cost_estimate=cost,
    )(*inputs)

    # Glue: drop row/Cout padding, back to NCHW.
    out_nhwc = out_pad[:R, :Cout].reshape(N, Ho, Wo, Cout)
    return jnp.transpose(out_nhwc, (0, 3, 1, 2))


if __name__ == "__main__":
    # BasicConv(in_planes=4, out_planes=8, kernel_size=3, stride=1,
    #           padding=1, relu=True, bias=False)
    N, Cin, H, W = 2, 4, 16, 16
    Cout, K = 8, 3

    key = jax.random.PRNGKey(0)
    kx, kw, kb = jax.random.split(key, 3)
    x = jax.random.normal(kx, (N, Cin, H, W), dtype=jnp.float32)
    fan_in = Cin * K * K
    bound = 1.0 / (fan_in ** 0.5)
    weight = jax.random.uniform(kw, (Cout, Cin, K, K),
                                minval=-bound, maxval=bound, dtype=jnp.float32)
    bias = jax.random.uniform(kb, (Cout,), minval=-bound, maxval=bound,
                              dtype=jnp.float32)

    # XLA reference convs (NCHW, OIHW).
    conv_ref = lax.conv_general_dilated(
        x, weight, window_strides=(1, 1), padding=((1, 1), (1, 1)),
        dimension_numbers=("NCHW", "OIHW", "NCHW"))
    ref = jnp.maximum(conv_ref, 0.0)
    ref_bias = jnp.maximum(conv_ref + bias[None, :, None, None], 0.0)
    conv_ref_s2 = lax.conv_general_dilated(
        x, weight, window_strides=(2, 2), padding=((1, 1), (1, 1)),
        dimension_numbers=("NCHW", "OIHW", "NCHW"))
    ref_s2 = jnp.maximum(conv_ref_s2, 0.0)

    # Default BasicConv path (bias=False, relu=True), f32 compute.
    out = basic_conv(x, weight, stride=1, padding=1, dilation=1, groups=1,
                     relu=True)
    out = jax.block_until_ready(out)
    assert out.shape == (N, Cout, H, W)
    assert jnp.allclose(out, ref, atol=1e-4, rtol=1e-4)

    # bias=True variant.
    out_b = basic_conv(x, weight, bias=bias, stride=1, padding=1, relu=True)
    out_b = jax.block_until_ready(out_b)
    assert jnp.allclose(out_b, ref_bias, atol=1e-4, rtol=1e-4)

    # stride=2 variant (wrapper-side space-to-depth keeps kernel unit-stride).
    out_s2 = basic_conv(x, weight, stride=2, padding=1, relu=True)
    out_s2 = jax.block_until_ready(out_s2)
    assert out_s2.shape == conv_ref_s2.shape
    assert jnp.allclose(out_s2, ref_s2, atol=1e-4, rtol=1e-4)

    # bf16 compute path (f32 accumulation) -- looser tolerance.
    out_bf16 = basic_conv(x, weight, stride=1, padding=1, relu=True,
                          compute_dtype=jnp.bfloat16)
    out_bf16 = jax.block_until_ready(out_bf16)
    assert jnp.allclose(out_bf16, ref, atol=5e-2, rtol=5e-2)

    print("KERNEL_OK")
</pallas_src>

<mosaic_0001>
module attributes {stable_mosaic.version = 11 : i64} {
  func.func @kernel(%arg0: i32, %arg1: i32, %arg2: i32, %arg3: memref<512x36xf32, #tpu.memory_space<vmem>>, %arg4: memref<36x128xf32, #tpu.memory_space<vmem>>, %arg5: memref<512x128xf32, #tpu.memory_space<vmem>>, %arg6: memref<512x128xf32, #tpu.memory_space<vmem>>) attributes {dimension_semantics = [#tpu.dimension_semantics<parallel>, #tpu.dimension_semantics<parallel>, #tpu.dimension_semantics<arbitrary>], iteration_bounds = array<i64: 1, 1, 1>, scalar_prefetch = 0 : i64, scratch_operands = 1 : i64, tpu.core_type = #tpu.core_type<tc>, window_params = [{transform_indices = @transform_0, window_bounds = array<i64: 512, 36>}, {transform_indices = @transform_1, window_bounds = array<i64: 36, 128>}, {transform_indices = @transform_2, window_bounds = array<i64: 512, 128>}]} {
    %c0_i32 = arith.constant 0 : i32
    %0 = arith.cmpi eq, %arg2, %c0_i32 : i32
    %1 = arith.extui %0 : i1 to i32
    %c0_i32_0 = arith.constant 0 : i32
    %2 = arith.cmpi ne, %1, %c0_i32_0 : i32
    scf.if %2 {
      %cst_10 = arith.constant 0.000000e+00 : f32
      %12 = vector.broadcast %cst_10 : f32 to vector<512x128xf32>
      %c0_11 = arith.constant 0 : index
      %c0_12 = arith.constant 0 : index
      %13 = vector.load %arg6[%c0_11, %c0_12] : memref<512x128xf32, #tpu.memory_space<vmem>>, vector<512x128xf32>
      tpu.vector_store %arg6[%c0_11, %c0_12], %12 {strides = array<i32>} : memref<512x128xf32, #tpu.memory_space<vmem>>, vector<512x128xf32>,
    } else {
    }
    %c0 = arith.constant 0 : index
    %c0_1 = arith.constant 0 : index
    %3 = vector.load %arg6[%c0, %c0_1] : memref<512x128xf32, #tpu.memory_space<vmem>>, vector<512x128xf32>
    %c0_2 = arith.constant 0 : index
    %c0_3 = arith.constant 0 : index
    %4 = vector.load %arg3[%c0_2, %c0_3] : memref<512x36xf32, #tpu.memory_space<vmem>>, vector<512x36xf32>
    %c0_4 = arith.constant 0 : index
    %c0_5 = arith.constant 0 : index
    %5 = vector.load %arg4[%c0_4, %c0_5] : memref<36x128xf32, #tpu.memory_space<vmem>>, vector<36x128xf32>
    %cst = arith.constant dense<0.000000e+00> : vector<512x128xf32>
    %6 = tpu.matmul %4, %5, %cst {dimension_numbers = #tpu.dot_dimension_numbers<[1], [0], [0], [1], [0, 0, 1, 1], [], []>} : vector<512x36xf32>, vector<36x128xf32>, vector<512x128xf32> -> vector<512x128xf32>
    %7 = arith.addf %3, %6 : vector<512x128xf32>
    %c0_6 = arith.constant 0 : index
    %c0_7 = arith.constant 0 : index
    %8 = vector.load %arg6[%c0_6, %c0_7] : memref<512x128xf32, #tpu.memory_space<vmem>>, vector<512x128xf32>
    tpu.vector_store %arg6[%c0_6, %c0_7], %7 {strides = array<i32>} : memref<512x128xf32, #tpu.memory_space<vmem>>, vector<512x128xf32>,
    %c0_i32_8 = arith.constant 0 : i32
    %9 = arith.cmpi eq, %arg2, %c0_i32_8 : i32
    %10 = arith.extui %9 : i1 to i32
    %c0_i32_9 = arith.constant 0 : i32
    %11 = arith.cmpi ne, %10, %c0_i32_9 : i32
    scf.if %11 {
      %c0_10 = arith.constant 0 : index
      %c0_11 = arith.constant 0 : index
      %12 = vector.load %arg6[%c0_10, %c0_11] : memref<512x128xf32, #tpu.memory_space<vmem>>, vector<512x128xf32>
      %cst_12 = arith.constant 0.000000e+00 : f32
      %13 = vector.broadcast %cst_12 : f32 to vector<512x128xf32>
      %14 = arith.maximumf %12, %13 : vector<512x128xf32>
      %c0_13 = arith.constant 0 : index
      %c0_14 = arith.constant 0 : index
      %15 = vector.load %arg5[%c0_13, %c0_14] : memref<512x128xf32, #tpu.memory_space<vmem>>, vector<512x128xf32>
      tpu.vector_store %arg5[%c0_13, %c0_14], %14 {strides = array<i32>} : memref<512x128xf32, #tpu.memory_space<vmem>>, vector<512x128xf32>,
    } else {
    }
    return
  }
  func.func @transform_0(%arg0: i32, %arg1: i32, %arg2: i32) -> (i32, i32) {
    %c0_i32 = arith.constant 0 : i32
    return %arg0, %arg2 : i32, i32
  }
  func.func @transform_1(%arg0: i32, %arg1: i32, %arg2: i32) -> (i32, i32) {
    %c0_i32 = arith.constant 0 : i32
    return %arg2, %arg1 : i32, i32
  }
  func.func @transform_2(%arg0: i32, %arg1: i32, %arg2: i32) -> (i32, i32) {
    %c0_i32 = arith.constant 0 : i32
    return %arg0, %arg1 : i32, i32
  }
}

</mosaic_0001>

<bundles_post_ra>
// kernel: tpu_custom_call.1
= control target key start
LH: loop header
LB: loop body
LE: loop exit
PB: predicated region body
PF: predicated region fallthrough
CT: control target
= control target key end

     0   :  { %vm406_vm0 = vcmask 1043456   ;;  %vm213_vm1 = vcmask 293888   ;;  %s1701_s0 = inlined_call_operand.vmem [shape: f32[512,36], index: 0, kind: input, shape index: {}]   ;;  %s1702_s1 = inlined_call_operand.vmem [shape: f32[36,128], index: 1, kind: input, shape index: {}]   ;;  %s1703_s2 = inlined_call_operand.hbm [shape: f32[512,128], index: 2, kind: output, shape index: {}]  }
   0x1   :  { %v212_v0 = vld [vmem:[%s1702_s1 + $0x20] sm:$0xf]  ;;  %v211_v1 = vld [vmem:[%s1702_s1 + $0x18] sm:$0xff]  ;;  %v210_v2 = vld [vmem:[%s1702_s1 + $0x10] sm:$0xff] }
   0x2   :  { %1268 = vmatprep.subr.msk.mxu0 %vm406_vm0, %v212_v0  ;;  %1374 = vmatprep.subr.msk.mxu1 %vm406_vm0, %v212_v0  ;;  %v209_v3 = vld [vmem:[%s1702_s1 + $0x8] sm:$0xff]  ;;  %v208_v4 = vld [vmem:[%s1702_s1] sm:$0xff]  ;;  %v146_v9 = vld [vmem:[%s1701_s0 + $0x10] sm:$0xff] }
   0x3   :  { %1269 = vmatpush3.msk.msra.mxu0 %vm406_vm0, %v212_v0  ;;  %1379 = vmatpush3.msk.msra.mxu1 %vm406_vm0, %v212_v0  ;;  %v144_v5 = vld [vmem:[%s1701_s0] sm:$0xff]  ;;  %v145_v7 = vld [vmem:[%s1701_s0 + $0x8] sm:$0xff]  ;;  %v178_v10 = vld [vmem:[%s1701_s0 + $0x110] sm:$0xff] }
   0x4   :  { %1270 = vmatprep.subr.mxu0 %v211_v1  ;;  %1375 = vmatprep.subr.mxu1 %v211_v1  ;;  %v176_v6 = vld [vmem:[%s1701_s0 + $0x100] sm:$0xff]  ;;  %v177_v8 = vld [vmem:[%s1701_s0 + $0x108] sm:$0xff]  ;;  %v147_v11 = vld [vmem:[%s1701_s0 + $0x18] sm:$0xff] }
   0x5   :  { %1271 = vmatpush3.msra.mxu0 %v211_v1  ;;  %1380 = vmatpush3.msra.mxu1 %v211_v1  ;;  %v179_v12 = vld [vmem:[%s1701_s0 + $0x118] sm:$0xff]  ;;  %v148_v13 = vld [vmem:[%s1701_s0 + $0x20] sm:$0xff]  ;;  %v149_v15 = vld [vmem:[%s1701_s0 + $0x28] sm:$0xff] }
   0x6   :  { %1272 = vmatprep.subr.mxu0 %v210_v2  ;;  %1376 = vmatprep.subr.mxu1 %v210_v2  ;;  %v180_v14 = vld [vmem:[%s1701_s0 + $0x120] sm:$0xff]  ;;  %v181_v16 = vld [vmem:[%s1701_s0 + $0x128] sm:$0xff]  ;;  %v150_v17 = vld [vmem:[%s1701_s0 + $0x30] sm:$0xff] }
   0x7   :  { %1273 = vmatpush3.msra.mxu0 %v210_v2  ;;  %1381 = vmatpush3.msra.mxu1 %v210_v2  ;;  %v182_v18 = vld [vmem:[%s1701_s0 + $0x130] sm:$0xff]  ;;  %v151_v19 = vld [vmem:[%s1701_s0 + $0x38] sm:$0xff]  ;;  %v152_v21 = vld [vmem:[%s1701_s0 + $0x40] sm:$0xff] }
   0x8   :  { %1274 = vmatprep.subr.mxu0 %v209_v3  ;;  %1377 = vmatprep.subr.mxu1 %v209_v3  ;;  %v183_v20 = vld [vmem:[%s1701_s0 + $0x138] sm:$0xff]  ;;  %v184_v22 = vld [vmem:[%s1701_s0 + $0x140] sm:$0xff] }
   0x9   :  { %1275 = vmatpush3.msra.mxu0 %v209_v3  ;;  %1382 = vmatpush3.msra.mxu1 %v209_v3 }
   0xa   :  { %1276 = vmatprep.subr.mxu0 %v208_v4  ;;  %1378 = vmatprep.subr.mxu1 %v208_v4 }
   0xb   :  { %1277 = vmatpush3.msra.mxu0 %v208_v4  ;;  %1383 = vmatpush3.msra.mxu1 %v208_v4 }
   0xc   :  { %1278 = vmatprep.mubr.msk.f32.mxu0 %vm213_vm1, %v144_v5  ;;  %1326 = vmatprep.mubr.msk.f32.mxu1 %vm213_vm1, %v176_v6 }
   0xd   :  { %1279 = vmatmul.mubr.msk.f32.vlgmr.msra.gmra.mxu0 %vm213_vm1, %v145_v7  ;;  %1327 = vmatmul.mubr.msk.f32.vlgmr.msra.gmra.mxu1 %vm213_vm1, %v177_v8 }
   0xe   :  { %1281 = vmatprep.mubr.msk.f32.mxu0 %vm213_vm1, %v146_v9  ;;  %1329 = vmatprep.mubr.msk.f32.mxu1 %vm213_vm1, %v178_v10 }
  0x11   :  { %1282 = vmatmul.mubr.msk.f32.gmra.mxu0 %vm213_vm1, %v147_v11  ;;  %1330 = vmatmul.mubr.msk.f32.gmra.mxu1 %vm213_vm1, %v179_v12 }
  0x12   :  { %1284 = vmatprep.mubr.msk.f32.mxu0 %vm213_vm1, %v148_v13  ;;  %1332 = vmatprep.mubr.msk.f32.mxu1 %vm213_vm1, %v180_v14 }
  0x15   :  { %1285 = vmatmul.mubr.msk.f32.gmra.mxu0 %vm213_vm1, %v149_v15  ;;  %1333 = vmatmul.mubr.msk.f32.gmra.mxu1 %vm213_vm1, %v181_v16 }
  0x16   :  { %1287 = vmatprep.mubr.msk.f32.mxu0 %vm213_vm1, %v150_v17  ;;  %1335 = vmatprep.mubr.msk.f32.mxu1 %vm213_vm1, %v182_v18 }
  0x17   :  { %7 = vsyncpa [#allocation4], 0  ;;  %v153_v23 = vld [vmem:[%s1701_s0 + $0x48] sm:$0xff]  ;;  %v154_v25 = vld [vmem:[%s1701_s0 + $0x50] sm:$0xff] }
  0x18   :  { %v185_v24 = vld [vmem:[%s1701_s0 + $0x148] sm:$0xff]  ;;  %v186_v26 = vld [vmem:[%s1701_s0 + $0x150] sm:$0xff]  ;;  %v155_v27 = vld [vmem:[%s1701_s0 + $0x58] sm:$0xff] }
  0x19   :  { %1288 = vmatmul.mubr.msk.f32.gmra.mxu0 %vm213_vm1, %v151_v19  ;;  %1336 = vmatmul.mubr.msk.f32.gmra.mxu1 %vm213_vm1, %v183_v20  ;;  %v187_v28 = vld [vmem:[%s1701_s0 + $0x158] sm:$0xff]  ;;  %v156_v29 = vld [vmem:[%s1701_s0 + $0x60] sm:$0xff]  ;;  %v157_v31 = vld [vmem:[%s1701_s0 + $0x68] sm:$0xff] }
  0x1a   :  { %1290 = vmatprep.mubr.msk.f32.mxu0 %vm213_vm1, %v152_v21  ;;  %1338 = vmatprep.mubr.msk.f32.mxu1 %vm213_vm1, %v184_v22  ;;  %v188_v30 = vld [vmem:[%s1701_s0 + $0x160] sm:$0xff]  ;;  %v189_v32 = vld [vmem:[%s1701_s0 + $0x168] sm:$0xff]  ;;  %v158_v33 = vld [vmem:[%s1701_s0 + $0x70] sm:$0xff] }
  0x1b   :  { %v190_v34 = vld [vmem:[%s1701_s0 + $0x170] sm:$0xff]  ;;  %v159_v35 = vld [vmem:[%s1701_s0 + $0x78] sm:$0xff]  ;;  %v160_v37 = vld [vmem:[%s1701_s0 + $0x80] sm:$0xff] }
  0x1c   :  { %v191_v36 = vld [vmem:[%s1701_s0 + $0x178] sm:$0xff]  ;;  %v192_v38 = vld [vmem:[%s1701_s0 + $0x180] sm:$0xff]  ;;  %v161_v39 = vld [vmem:[%s1701_s0 + $0x88] sm:$0xff] }
  0x1d   :  { %1291 = vmatmul.mubr.msk.f32.gmra.mxu0 %vm213_vm1, %v153_v23  ;;  %1339 = vmatmul.mubr.msk.f32.gmra.mxu1 %vm213_vm1, %v185_v24  ;;  %v193_v40 = vld [vmem:[%s1701_s0 + $0x188] sm:$0xff]  ;;  %v162_v41 = vld [vmem:[%s1701_s0 + $0x90] sm:$0xff]  ;;  %v163_v43 = vld [vmem:[%s1701_s0 + $0x98] sm:$0xff] }
  0x1e   :  { %1293 = vmatprep.mubr.msk.f32.mxu0 %vm213_vm1, %v154_v25  ;;  %1341 = vmatprep.mubr.msk.f32.mxu1 %vm213_vm1, %v186_v26  ;;  %v194_v42 = vld [vmem:[%s1701_s0 + $0x190] sm:$0xff]  ;;  %v195_v44 = vld [vmem:[%s1701_s0 + $0x198] sm:$0xff]  ;;  %v164_v45 = vld [vmem:[%s1701_s0 + $0xa0] sm:$0xff] }
  0x1f   :  { %v196_v46 = vld [vmem:[%s1701_s0 + $0x1a0] sm:$0xff]  ;;  %v165_v47 = vld [vmem:[%s1701_s0 + $0xa8] sm:$0xff]  ;;  %v166_v49 = vld [vmem:[%s1701_s0 + $0xb0] sm:$0xff] }
  0x20   :  { %v197_v48 = vld [vmem:[%s1701_s0 + $0x1a8] sm:$0xff]  ;;  %v198_v50 = vld [vmem:[%s1701_s0 + $0x1b0] sm:$0xff]  ;;  %v167_v51 = vld [vmem:[%s1701_s0 + $0xb8] sm:$0xff] }
  0x21   :  { %1294 = vmatmul.mubr.msk.f32.gmra.mxu0 %vm213_vm1, %v155_v27  ;;  %1342 = vmatmul.mubr.msk.f32.gmra.mxu1 %vm213_vm1, %v187_v28  ;;  %v199_v52 = vld [vmem:[%s1701_s0 + $0x1b8] sm:$0xff]  ;;  %v168_v53 = vld [vmem:[%s1701_s0 + $0xc0] sm:$0xff]  ;;  %v169_v55 = vld [vmem:[%s1701_s0 + $0xc8] sm:$0xff] }
  0x22   :  { %1296 = vmatprep.mubr.msk.f32.mxu0 %vm213_vm1, %v156_v29  ;;  %1344 = vmatprep.mubr.msk.f32.mxu1 %vm213_vm1, %v188_v30  ;;  %v200_v54 = vld [vmem:[%s1701_s0 + $0x1c0] sm:$0xff]  ;;  %v201_v56 = vld [vmem:[%s1701_s0 + $0x1c8] sm:$0xff]  ;;  %v170_v57 = vld [vmem:[%s1701_s0 + $0xd0] sm:$0xff] }
  0x23   :  { %v202_v58 = vld [vmem:[%s1701_s0 + $0x1d0] sm:$0xff]  ;;  %v171_v59 = vld [vmem:[%s1701_s0 + $0xd8] sm:$0xff]  ;;  %v172_v61 = vld [vmem:[%s1701_s0 + $0xe0] sm:$0xff] }
  0x24   :  { %v203_v60 = vld [vmem:[%s1701_s0 + $0x1d8] sm:$0xff]  ;;  %v204_v62 = vld [vmem:[%s1701_s0 + $0x1e0] sm:$0xff]  ;;  %v173_v63 = vld [vmem:[%s1701_s0 + $0xe8] sm:$0xff] }
  0x25   :  { %1297 = vmatmul.mubr.msk.f32.gmra.mxu0 %vm213_vm1, %v157_v31  ;;  %1345 = vmatmul.mubr.msk.f32.gmra.mxu1 %vm213_vm1, %v189_v32  ;;  %v205_v0 = vld [vmem:[%s1701_s0 + $0x1e8] sm:$0xff]  ;;  %v174_v1 = vld [vmem:[%s1701_s0 + $0xf0] sm:$0xff]  ;;  %v175_v3 = vld [vmem:[%s1701_s0 + $0xf8] sm:$0xff] }
  0x26   :  { %1299 = vmatprep.mubr.msk.f32.mxu0 %vm213_vm1, %v158_v33  ;;  %1347 = vmatprep.mubr.msk.f32.mxu1 %vm213_vm1, %v190_v34  ;;  %v206_v2 = vld [vmem:[%s1701_s0 + $0x1f0] sm:$0xff]  ;;  %v207_v4 = vld [vmem:[%s1701_s0 + $0x1f8] sm:$0xff]  ;;  %s1409_s0 = smov [#allocation3]  }
  0x27   :  { %s1123_s30 = sshll.u32 %s1409_s0, 4  ;;  %s1124_s30 = int_to_ptr.vmem [resolvable:$true] %s1123_s30 }
  0x28   :  { %s1387_s3 = scalar_lea.vmem %s1124_s30, 8192  ;;  %p1392_p1 = scmp.lt.s32.totalorder %s1124_s30, %s1124_s30 }
  0x29   :  { %1300 = vmatmul.mubr.msk.f32.gmra.mxu0 %vm213_vm1, %v159_v35  ;;  %1348 = vmatmul.mubr.msk.f32.gmra.mxu1 %vm213_vm1, %v191_v36  ;;  %p1388_p0 = scmp.ne.s32.totalorder %s1124_s30, %s1387_s3  ;;  %p1393_p2 = scmp.lt.s32.totalorder %s1387_s3, %s1387_s3 }
  0x2a   :  { %1302 = vmatprep.mubr.msk.f32.mxu0 %vm213_vm1, %v160_v37  ;;  %1350 = vmatprep.mubr.msk.f32.mxu1 %vm213_vm1, %v192_v38 }
  0x2b   :  { %p1394_p3 = por %p1393_p2, %p1392_p1 }
  0x2d   :  { %1303 = vmatmul.mubr.msk.f32.gmra.mxu0 %vm213_vm1, %v161_v39  ;;  %1351 = vmatmul.mubr.msk.f32.gmra.mxu1 %vm213_vm1, %v193_v40  ;;  %p1395_p4 = pnand %p1394_p3, %p1388_p0 }
  0x2e   :  { %1305 = vmatprep.mubr.msk.f32.mxu0 %vm213_vm1, %v162_v41  ;;  %1353 = vmatprep.mubr.msk.f32.mxu1 %vm213_vm1, %v194_v42 }
  0x31   :  { %1306 = vmatmul.mubr.msk.f32.gmra.mxu0 %vm213_vm1, %v163_v43  ;;  %1354 = vmatmul.mubr.msk.f32.gmra.mxu1 %vm213_vm1, %v195_v44 }
  0x32   :  { %1308 = vmatprep.mubr.msk.f32.mxu0 %vm213_vm1, %v164_v45  ;;  %1356 = vmatprep.mubr.msk.f32.mxu1 %vm213_vm1, %v196_v46 }
  0x35   :  { %1309 = vmatmul.mubr.msk.f32.gmra.mxu0 %vm213_vm1, %v165_v47  ;;  %1357 = vmatmul.mubr.msk.f32.gmra.mxu1 %vm213_vm1, %v197_v48 }
  0x36   :  { %1311 = vmatprep.mubr.msk.f32.mxu0 %vm213_vm1, %v166_v49  ;;  %1359 = vmatprep.mubr.msk.f32.mxu1 %vm213_vm1, %v198_v50 }
  0x39   :  { %1312 = vmatmul.mubr.msk.f32.gmra.mxu0 %vm213_vm1, %v167_v51  ;;  %1360 = vmatmul.mubr.msk.f32.gmra.mxu1 %vm213_vm1, %v199_v52 }
  0x3a   :  { %1314 = vmatprep.mubr.msk.f32.mxu0 %vm213_vm1, %v168_v53  ;;  %1362 = vmatprep.mubr.msk.f32.mxu1 %vm213_vm1, %v200_v54 }
  0x3d   :  { %1315 = vmatmul.mubr.msk.f32.gmra.mxu0 %vm213_vm1, %v169_v55  ;;  %1363 = vmatmul.mubr.msk.f32.gmra.mxu1 %vm213_vm1, %v201_v56 }
  0x3e   :  { %1317 = vmatprep.mubr.msk.f32.mxu0 %vm213_vm1, %v170_v57  ;;  %1365 = vmatprep.mubr.msk.f32.mxu1 %vm213_vm1, %v202_v58 }
  0x41   :  { %1318 = vmatmul.mubr.msk.f32.gmra.mxu0 %vm213_vm1, %v171_v59  ;;  %1366 = vmatmul.mubr.msk.f32.gmra.mxu1 %vm213_vm1, %v203_v60 }
  0x42   :  { %1320 = vmatprep.mubr.msk.f32.mxu0 %vm213_vm1, %v172_v61  ;;  %1368 = vmatprep.mubr.msk.f32.mxu1 %vm213_vm1, %v204_v62 }
  0x45   :  { %1321 = vmatmul.mubr.msk.f32.gmra.mxu0 %vm213_vm1, %v173_v63  ;;  %1369 = vmatmul.mubr.msk.f32.gmra.mxu1 %vm213_vm1, %v205_v0 }
  0x46   :  { %1323 = vmatprep.mubr.msk.f32.mxu0 %vm213_vm1, %v174_v1  ;;  %1371 = vmatprep.mubr.msk.f32.mxu1 %vm213_vm1, %v206_v2 }
  0x49   :  { %1324 = vmatmul.mubr.msk.f32.gmra.mxu0 %vm213_vm1, %v175_v3  ;;  %1372 = vmatmul.mubr.msk.f32.gmra.mxu1 %vm213_vm1, %v207_v4 }
  0xcd   :  { %v1280_v5 = vpop.f32.mrf.mxu0  ;;  %v1328_v6 = vpop.f32.mrf.mxu1 }
  0xce   :  { %v991_v7 = vmax.f32 %v1280_v5, 0.0  ;;  %v1023_v8 = vmax.f32 %v1328_v6, 0.0 }
  0xcf   :  { %v476_v9 = vpop.f32.mrf.mxu0  ;;  %v636_v10 = vpop.f32.mrf.mxu1 }
  0xd0   :  { %1055 = vst [vmem:[#allocation3 + $0x8] sm:$0xff] %v991_v7  ;;  %1087 = vst [vmem:[#allocation3 + $0x108] sm:$0xff] %v1023_v8  ;;  %v990_v11 = vmax.f32 %v476_v9, 0.0  ;;  %v1022_v12 = vmax.f32 %v636_v10, 0.0 }
  0xd1   :  { %v1283_v13 = vpop.f32.mrf.mxu0  ;;  %v1331_v14 = vpop.f32.mrf.mxu1 }
  0xd2   :  { %1054 = vst [vmem:[#allocation3] sm:$0xff] %v990_v11  ;;  %1086 = vst [vmem:[#allocation3 + $0x100] sm:$0xff] %v1022_v12  ;;  %v993_v15 = vmax.f32 %v1283_v13, 0.0  ;;  %v1025_v16 = vmax.f32 %v1331_v14, 0.0 }
  0xd3   :  { %v486_v17 = vpop.f32.mrf.mxu0  ;;  %v646_v18 = vpop.f32.mrf.mxu1 }
  0xd4   :  { %1057 = vst [vmem:[#allocation3 + $0x18] sm:$0xff] %v993_v15  ;;  %1089 = vst [vmem:[#allocation3 + $0x118] sm:$0xff] %v1025_v16  ;;  %v992_v19 = vmax.f32 %v486_v17, 0.0  ;;  %v1024_v20 = vmax.f32 %v646_v18, 0.0 }
  0xd5   :  { %v1286_v21 = vpop.f32.mrf.mxu0  ;;  %v1334_v22 = vpop.f32.mrf.mxu1 }
  0xd6   :  { %1056 = vst [vmem:[#allocation3 + $0x10] sm:$0xff] %v992_v19  ;;  %1088 = vst [vmem:[#allocation3 + $0x110] sm:$0xff] %v1024_v20  ;;  %v995_v23 = vmax.f32 %v1286_v21, 0.0  ;;  %v1027_v24 = vmax.f32 %v1334_v22, 0.0 }
  0xd7   :  { %v496_v25 = vpop.f32.mrf.mxu0  ;;  %v656_v26 = vpop.f32.mrf.mxu1 }
  0xd8   :  { %1059 = vst [vmem:[#allocation3 + $0x28] sm:$0xff] %v995_v23  ;;  %1091 = vst [vmem:[#allocation3 + $0x128] sm:$0xff] %v1027_v24  ;;  %v994_v27 = vmax.f32 %v496_v25, 0.0  ;;  %v1026_v28 = vmax.f32 %v656_v26, 0.0 }
  0xd9   :  { %v1289_v29 = vpop.f32.mrf.mxu0  ;;  %v1337_v30 = vpop.f32.mrf.mxu1 }
  0xda   :  { %1058 = vst [vmem:[#allocation3 + $0x20] sm:$0xff] %v994_v27  ;;  %1090 = vst [vmem:[#allocation3 + $0x120] sm:$0xff] %v1026_v28  ;;  %v997_v31 = vmax.f32 %v1289_v29, 0.0  ;;  %v1029_v32 = vmax.f32 %v1337_v30, 0.0 }
  0xdb   :  { %v506_v33 = vpop.f32.mrf.mxu0  ;;  %v666_v34 = vpop.f32.mrf.mxu1 }
  0xdc   :  { %1061 = vst [vmem:[#allocation3 + $0x38] sm:$0xff] %v997_v31  ;;  %1093 = vst [vmem:[#allocation3 + $0x138] sm:$0xff] %v1029_v32  ;;  %v996_v35 = vmax.f32 %v506_v33, 0.0  ;;  %v1028_v36 = vmax.f32 %v666_v34, 0.0 }
  0xdd   :  { %v1292_v37 = vpop.f32.mrf.mxu0  ;;  %v1340_v38 = vpop.f32.mrf.mxu1 }
  0xde   :  { %1060 = vst [vmem:[#allocation3 + $0x30] sm:$0xff] %v996_v35  ;;  %1092 = vst [vmem:[#allocation3 + $0x130] sm:$0xff] %v1028_v36  ;;  %v999_v39 = vmax.f32 %v1292_v37, 0.0  ;;  %v1031_v40 = vmax.f32 %v1340_v38, 0.0 }
  0xdf   :  { %v516_v41 = vpop.f32.mrf.mxu0  ;;  %v676_v42 = vpop.f32.mrf.mxu1 }
  0xe0   :  { %1063 = vst [vmem:[#allocation3 + $0x48] sm:$0xff] %v999_v39  ;;  %1095 = vst [vmem:[#allocation3 + $0x148] sm:$0xff] %v1031_v40  ;;  %v998_v43 = vmax.f32 %v516_v41, 0.0  ;;  %v1030_v44 = vmax.f32 %v676_v42, 0.0 }
  0xe1   :  { %v1295_v45 = vpop.f32.mrf.mxu0  ;;  %v1343_v46 = vpop.f32.mrf.mxu1 }
  0xe2   :  { %1062 = vst [vmem:[#allocation3 + $0x40] sm:$0xff] %v998_v43  ;;  %1094 = vst [vmem:[#allocation3 + $0x140] sm:$0xff] %v1030_v44  ;;  %v1001_v47 = vmax.f32 %v1295_v45, 0.0  ;;  %v1033_v48 = vmax.f32 %v1343_v46, 0.0 }
  0xe3   :  { %v526_v49 = vpop.f32.mrf.mxu0  ;;  %v686_v50 = vpop.f32.mrf.mxu1 }
  0xe4   :  { %1065 = vst [vmem:[#allocation3 + $0x58] sm:$0xff] %v1001_v47  ;;  %1097 = vst [vmem:[#allocation3 + $0x158] sm:$0xff] %v1033_v48  ;;  %v1000_v51 = vmax.f32 %v526_v49, 0.0  ;;  %v1032_v52 = vmax.f32 %v686_v50, 0.0 }
  0xe5   :  { %v1298_v53 = vpop.f32.mrf.mxu0  ;;  %v1346_v54 = vpop.f32.mrf.mxu1 }
  0xe6   :  { %1064 = vst [vmem:[#allocation3 + $0x50] sm:$0xff] %v1000_v51  ;;  %1096 = vst [vmem:[#allocation3 + $0x150] sm:$0xff] %v1032_v52  ;;  %v1003_v55 = vmax.f32 %v1298_v53, 0.0  ;;  %v1035_v56 = vmax.f32 %v1346_v54, 0.0 }
  0xe7   :  { %v536_v57 = vpop.f32.mrf.mxu0  ;;  %v696_v58 = vpop.f32.mrf.mxu1 }
  0xe8   :  { %1067 = vst [vmem:[#allocation3 + $0x68] sm:$0xff] %v1003_v55  ;;  %1099 = vst [vmem:[#allocation3 + $0x168] sm:$0xff] %v1035_v56  ;;  %v1002_v59 = vmax.f32 %v536_v57, 0.0  ;;  %v1034_v60 = vmax.f32 %v696_v58, 0.0 }
  0xe9   :  { %v1301_v61 = vpop.f32.mrf.mxu0  ;;  %v1349_v62 = vpop.f32.mrf.mxu1 }
  0xea   :  { %1066 = vst [vmem:[#allocation3 + $0x60] sm:$0xff] %v1002_v59  ;;  %1098 = vst [vmem:[#allocation3 + $0x160] sm:$0xff] %v1034_v60  ;;  %v1005_v63 = vmax.f32 %v1301_v61, 0.0  ;;  %v1037_v0 = vmax.f32 %v1349_v62, 0.0 }
  0xeb   :  { %v546_v1 = vpop.f32.mrf.mxu0  ;;  %v706_v2 = vpop.f32.mrf.mxu1 }
  0xec   :  { %1069 = vst [vmem:[#allocation3 + $0x78] sm:$0xff] %v1005_v63  ;;  %1101 = vst [vmem:[#allocation3 + $0x178] sm:$0xff] %v1037_v0  ;;  %v1004_v3 = vmax.f32 %v546_v1, 0.0  ;;  %v1036_v4 = vmax.f32 %v706_v2, 0.0 }
  0xed   :  { %v1304_v5 = vpop.f32.mrf.mxu0  ;;  %v1352_v6 = vpop.f32.mrf.mxu1 }
  0xee   :  { %1068 = vst [vmem:[#allocation3 + $0x70] sm:$0xff] %v1004_v3  ;;  %1100 = vst [vmem:[#allocation3 + $0x170] sm:$0xff] %v1036_v4  ;;  %v1007_v7 = vmax.f32 %v1304_v5, 0.0  ;;  %v1039_v8 = vmax.f32 %v1352_v6, 0.0 }
  0xef   :  { %v556_v9 = vpop.f32.mrf.mxu0  ;;  %v716_v10 = vpop.f32.mrf.mxu1 }
  0xf0   :  { %1071 = vst [vmem:[#allocation3 + $0x88] sm:$0xff] %v1007_v7  ;;  %1103 = vst [vmem:[#allocation3 + $0x188] sm:$0xff] %v1039_v8  ;;  %v1006_v11 = vmax.f32 %v556_v9, 0.0  ;;  %v1038_v12 = vmax.f32 %v716_v10, 0.0 }
  0xf1   :  { %v1307_v13 = vpop.f32.mrf.mxu0  ;;  %v1355_v14 = vpop.f32.mrf.mxu1 }
  0xf2   :  { %1070 = vst [vmem:[#allocation3 + $0x80] sm:$0xff] %v1006_v11  ;;  %1102 = vst [vmem:[#allocation3 + $0x180] sm:$0xff] %v1038_v12  ;;  %v1009_v15 = vmax.f32 %v1307_v13, 0.0  ;;  %v1041_v16 = vmax.f32 %v1355_v14, 0.0 }
  0xf3   :  { %v566_v17 = vpop.f32.mrf.mxu0  ;;  %v726_v18 = vpop.f32.mrf.mxu1 }
  0xf4   :  { %1073 = vst [vmem:[#allocation3 + $0x98] sm:$0xff] %v1009_v15  ;;  %1105 = vst [vmem:[#allocation3 + $0x198] sm:$0xff] %v1041_v16  ;;  %v1008_v19 = vmax.f32 %v566_v17, 0.0  ;;  %v1040_v20 = vmax.f32 %v726_v18, 0.0 }
  0xf5   :  { %v1310_v21 = vpop.f32.mrf.mxu0  ;;  %v1358_v22 = vpop.f32.mrf.mxu1 }
  0xf6   :  { %1072 = vst [vmem:[#allocation3 + $0x90] sm:$0xff] %v1008_v19  ;;  %1104 = vst [vmem:[#allocation3 + $0x190] sm:$0xff] %v1040_v20  ;;  %v1011_v23 = vmax.f32 %v1310_v21, 0.0  ;;  %v1043_v24 = vmax.f32 %v1358_v22, 0.0 }
  0xf7   :  { %v576_v25 = vpop.f32.mrf.mxu0  ;;  %v736_v26 = vpop.f32.mrf.mxu1 }
  0xf8   :  { %1075 = vst [vmem:[#allocation3 + $0xa8] sm:$0xff] %v1011_v23  ;;  %1107 = vst [vmem:[#allocation3 + $0x1a8] sm:$0xff] %v1043_v24  ;;  %v1010_v27 = vmax.f32 %v576_v25, 0.0  ;;  %v1042_v28 = vmax.f32 %v736_v26, 0.0 }
  0xf9   :  { %v1313_v29 = vpop.f32.mrf.mxu0  ;;  %v1361_v30 = vpop.f32.mrf.mxu1 }
  0xfa   :  { %1074 = vst [vmem:[#allocation3 + $0xa0] sm:$0xff] %v1010_v27  ;;  %1106 = vst [vmem:[#allocation3 + $0x1a0] sm:$0xff] %v1042_v28  ;;  %v1013_v31 = vmax.f32 %v1313_v29, 0.0  ;;  %v1045_v32 = vmax.f32 %v1361_v30, 0.0 }
  0xfb   :  { %v586_v33 = vpop.f32.mrf.mxu0  ;;  %v746_v34 = vpop.f32.mrf.mxu1 }
  0xfc   :  { %1077 = vst [vmem:[#allocation3 + $0xb8] sm:$0xff] %v1013_v31  ;;  %1109 = vst [vmem:[#allocation3 + $0x1b8] sm:$0xff] %v1045_v32  ;;  %v1012_v35 = vmax.f32 %v586_v33, 0.0  ;;  %v1044_v36 = vmax.f32 %v746_v34, 0.0 }
  0xfd   :  { %v1316_v37 = vpop.f32.mrf.mxu0  ;;  %v1364_v38 = vpop.f32.mrf.mxu1 }
  0xfe   :  { %1076 = vst [vmem:[#allocation3 + $0xb0] sm:$0xff] %v1012_v35  ;;  %1108 = vst [vmem:[#allocation3 + $0x1b0] sm:$0xff] %v1044_v36  ;;  %v1015_v39 = vmax.f32 %v1316_v37, 0.0  ;;  %v1047_v40 = vmax.f32 %v1364_v38, 0.0 }
  0xff   :  { %v596_v41 = vpop.f32.mrf.mxu0  ;;  %v756_v42 = vpop.f32.mrf.mxu1 }
 0x100   :  { %1079 = vst [vmem:[#allocation3 + $0xc8] sm:$0xff] %v1015_v39  ;;  %1111 = vst [vmem:[#allocation3 + $0x1c8] sm:$0xff] %v1047_v40  ;;  %v1014_v43 = vmax.f32 %v596_v41, 0.0  ;;  %v1046_v44 = vmax.f32 %v756_v42, 0.0 }
 0x101   :  { %v1319_v45 = vpop.f32.mrf.mxu0  ;;  %v1367_v46 = vpop.f32.mrf.mxu1 }
 0x102   :  { %1078 = vst [vmem:[#allocation3 + $0xc0] sm:$0xff] %v1014_v43  ;;  %1110 = vst [vmem:[#allocation3 + $0x1c0] sm:$0xff] %v1046_v44  ;;  %v1017_v47 = vmax.f32 %v1319_v45, 0.0  ;;  %v1049_v48 = vmax.f32 %v1367_v46, 0.0 }
 0x103   :  { %v606_v49 = vpop.f32.mrf.mxu0  ;;  %v766_v50 = vpop.f32.mrf.mxu1 }
 0x104   :  { %1081 = vst [vmem:[#allocation3 + $0xd8] sm:$0xff] %v1017_v47  ;;  %1113 = vst [vmem:[#allocation3 + $0x1d8] sm:$0xff] %v1049_v48  ;;  %v1016_v51 = vmax.f32 %v606_v49, 0.0  ;;  %v1048_v52 = vmax.f32 %v766_v50, 0.0 }
 0x105   :  { %v1322_v53 = vpop.f32.mrf.mxu0  ;;  %v1370_v54 = vpop.f32.mrf.mxu1 }
 0x106   :  { %1080 = vst [vmem:[#allocation3 + $0xd0] sm:$0xff] %v1016_v51  ;;  %1112 = vst [vmem:[#allocation3 + $0x1d0] sm:$0xff] %v1048_v52  ;;  %v1019_v55 = vmax.f32 %v1322_v53, 0.0  ;;  %v1051_v56 = vmax.f32 %v1370_v54, 0.0 }
 0x107   :  { %v616_v57 = vpop.f32.mrf.mxu0  ;;  %v776_v58 = vpop.f32.mrf.mxu1 }
 0x108   :  { %1083 = vst [vmem:[#allocation3 + $0xe8] sm:$0xff] %v1019_v55  ;;  %1115 = vst [vmem:[#allocation3 + $0x1e8] sm:$0xff] %v1051_v56  ;;  %v1018_v59 = vmax.f32 %v616_v57, 0.0  ;;  %v1050_v60 = vmax.f32 %v776_v58, 0.0 }
 0x109   :  { %v1325_v61 = vpop.f32.mrf.mxu0  ;;  %v1373_v62 = vpop.f32.mrf.mxu1 }
 0x10a   :  { %1082 = vst [vmem:[#allocation3 + $0xe0] sm:$0xff] %v1018_v59  ;;  %1114 = vst [vmem:[#allocation3 + $0x1e0] sm:$0xff] %v1050_v60  ;;  %v1021_v63 = vmax.f32 %v1325_v61, 0.0  ;;  %v1053_v0 = vmax.f32 %v1373_v62, 0.0 }
 0x10b   :  { %v626_v1 = vpop.f32.mrf.mxu0  ;;  %v786_v2 = vpop.f32.mrf.mxu1 }
 0x10c   :  { %1085 = vst [vmem:[#allocation3 + $0xf8] sm:$0xff] %v1021_v63  ;;  %1117 = vst [vmem:[#allocation3 + $0x1f8] sm:$0xff] %v1053_v0  ;;  %v1020_v3 = vmax.f32 %v626_v1, 0.0  ;;  %v1052_v4 = vmax.f32 %v786_v2, 0.0 }
 0x10e   :  { %1084 = vst [vmem:[#allocation3 + $0xf0] sm:$0xff] %v1020_v3  ;;  %1116 = vst [vmem:[#allocation3 + $0x1f0] sm:$0xff] %v1052_v4 }
 0x10f   :  { %1398 = shalt.err (!%p1395_p4)
}
 0x110   :  { %s1410_s4 = smov 128   ;;  %s1411_s5 = smov 8  }
 0x111   :  { %1129 = dma.vmem_to_hbm [thread:$0]  %s1124_s30, 8192, %s1703_s2, [#allocation4], %s1410_s4, %s1410_s4, %s1411_s5  }
 0x112   :  { %1407 = dma.done.wait [#allocation4], 8192  }
 0x113   :  { %1408 = vsyncadd [#allocation4], 4294959104 }
 0x114   :  { %1133 = vsyncpa [#allocation4], 1 }

</bundles_post_ra>
